<compile_context>
chip_gen: v7x
topology: tpu7x:2x2x1
jax: 0.10.0
libtpu: 0.0.40
codegen_flags: <defaults>
</compile_context>

<pallas_src>
import jax
import jax.numpy as jnp
from jax import lax
from jax.experimental import pallas as pl
from jax.experimental.pallas import tpu as pltpu

NEG_SLOPE = 0.2  # ICNN.negative_slope


# --------------------------- core in-kernel compute -------------------------- #
def _icnn_grad_blend(x, wfp, wbp, blin, wzf, wzb, xlast, wzlast, *, L, H, sc):
    """(1 - sc) * d(sum ICNN.scalar)/dx + sc * x, analytic backward (ones cotangent).

    All weight arguments are jnp arrays already loaded from VMEM:
      wfp    : (D, 2*L*H)  cols [l*H:(l+1)*H]       = wx_quad[l].T
                           cols [(L+l)*H:(L+l+1)*H] = wx_lin[l].T
      wbp    : (2*L*H, D)  = wfp.T (backward orientation, pre-stored — no in-kernel .T)
      blin   : (1, L*H)    wx_lin biases
      wzf    : (L-1, H, H) wzf[l] = wz[l].T   (forward:  z  @ wz[l].T)
      wzb    : (L-1, H, H) wzb[l] = wz[l]     (backward: dp @ wz[l])
      xlast  : (2, D)      row 0 = wx_quad[-1], row 1 = wx_lin[-1]
      wzlast : (1, H)      wz[-1]
    """
    B = x.shape[0]
    LH = L * H

    # ---- forward pass of ICNN.scalar ----
    # One lane-dense matmul for all 2*L x-projections (2*L*H = 256 lanes).
    proj = jnp.dot(x, wfp, preferred_element_type=jnp.float32)          # (B, 2*L*H)
    quad_all = proj[:, :LH]                                             # (B, L*H)
    # Full-vreg elementwise precompute: quad^2 + lin + bias over all layers at once.
    pre = quad_all * quad_all + proj[:, LH:] + blin                     # (B, L*H)

    slopes = []
    z = None
    # NOTE: L is small/static; only the sequential z@wz / leaky-relu part is per-layer.
    for l in range(L):
        p = pre[:, l * H:(l + 1) * H]
        if l > 0:
            p = p + jnp.dot(z, wzf[l - 1], preferred_element_type=jnp.float32)
        s = jnp.where(p > 0, 1.0, NEG_SLOPE)        # save only leaky_relu' mask
        slopes.append(s)
        z = p * s                                    # reuse slope: no second select

    # ---- analytic backward, cotangent on the scalar is ones (autograd.grad(ones)) ----
    aq_last = xlast[0:1, :]                                             # (1, D)
    bl_last = xlast[1:2, :]                                             # (1, D)
    # u_last = x @ aq_last.T is rank-1: VPU mul + lane reduce, skip the MXU.
    u_last = jnp.sum(x * aq_last, axis=-1, keepdims=True)               # (B, 1)
    # Last-layer grads with ones cotangent are rank-1 outer products -> VPU broadcasts.
    dx = 2.0 * u_last * aq_last + bl_last                               # (B, D)
    dz = jnp.broadcast_to(wzlast, (B, H))                               # (B, H)

    dps = [None] * L
    for l in range(L - 1, -1, -1):
        dp = dz * slopes[l]
        dps[l] = dp
        if l > 0:
            dz = jnp.dot(dp, wzb[l - 1], preferred_element_type=jnp.float32)

    # Only L chunk writes for dp_all; quad-scale done once at full vreg width.
    dp_all = jnp.concatenate(dps, axis=-1)                              # (B, L*H)
    cot_quad = 2.0 * quad_all * dp_all                                  # full-vreg mul
    cot_all = jnp.concatenate([cot_quad, dp_all], axis=-1)              # (B, 2*L*H)

    # One stacked (B, 2*L*H) @ (2*L*H, D) matmul instead of 2*L tiny ones.
    dx = dx + jnp.dot(cot_all, wbp, preferred_element_type=jnp.float32)

    return (1.0 - sc) * dx + sc * x


_WEIGHT_KEYS = ("w_fproj", "w_bproj", "b_lin", "wz_f", "wz_b", "x_last", "wz_last")


# ---------------------- single ICNN.forward as one kernel -------------------- #
def make_icnn_kernel(L, H, sc):
    def kernel(x_ref, wfp, wbp, blin, wzf, wzb, xlast, wzlast, out_ref):
        out_ref[...] = _icnn_grad_blend(
            x_ref[...], wfp[...], wbp[...], blin[...], wzf[...], wzb[...],
            xlast[...], wzlast[...], L=L, H=H, sc=sc).astype(out_ref.dtype)
    return kernel


def icnn_apply(packed, x, *, batch_tile=None):
    """ICNN.forward(x) as a single pallas_call (batch-parallel grid axis).

    Default tiling gives >=2 balanced batch tiles once B >= 16 (and B/2 is a multiple
    of 8 sublanes) so v7x's two TensorCores both get work; at small B it is one tile.
    """
    B, D = x.shape
    L, H = packed["num_layers"], packed["hidden"]
    if batch_tile is None:
        half = B // 2
        batch_tile = half if (B >= 16 and half % 8 == 0 and B % half == 0) else B
    tb = min(batch_tile, B)
    assert B % tb == 0
    weight_spec = pl.BlockSpec(memory_space=pltpu.MemorySpace.VMEM)
    # TODO(synk): when tb/H/D scale up, re-derive the VMEM budget for v7x (64 MiB) and
    # present a lane-dense (>=128-wide) output slab wrapper-side; negligible at D=16.
    return pl.pallas_call(
        make_icnn_kernel(L, H, packed["strong_convexity"]),
        out_shape=jax.ShapeDtypeStruct((B, D), jnp.float32),
        grid=(B // tb,),
        in_specs=[pl.BlockSpec((tb, D), lambda b: (b, 0))]
                 + [weight_spec] * len(_WEIGHT_KEYS),
        out_specs=pl.BlockSpec((tb, D), lambda b: (b, 0)),
        compiler_params=pltpu.CompilerParams(
            dimension_semantics=("parallel",)),   # shards batch tiles across v7x's 2 TCs
    )(x, *(packed[k] for k in _WEIGHT_KEYS))


# ------- fused ICNNCouple-style loop: ONE kernel invocation, in-kernel loop ---- #
def make_couple_kernel(L, H, sc_fwd, sc_bwd, grad_fun, n_iters):
    def kernel(ss_ref, x_ref, wfp2, wbp2, blin2, wzf2, wzb2, xlast2, wzlast2, out_ref):
        x = x_ref[...]

        # fwd_model(x) always takes the ORIGINAL x in the reference -> compute once.
        fx = _icnn_grad_blend(
            x, wfp2[0], wbp2[0], blin2[0], wzf2[0], wzb2[0], xlast2[0], wzlast2[0],
            L=L, H=H, sc=sc_fwd)

        # Hoist backward-model weight loads out of the unrolled loop (no CSE of loads).
        b_wfp, b_wbp, b_blin = wfp2[1], wbp2[1], blin2[1]
        b_wzf, b_wzb, b_xl, b_wzl = wzf2[1], wzb2[1], xlast2[1], wzlast2[1]

        def body(it, fwd):
            v = fx - ss_ref[it] * grad_fun(fwd)
            return _icnn_grad_blend(
                v, b_wfp, b_wbp, b_blin, b_wzf, b_wzb, b_xl, b_wzl,
                L=L, H=H, sc=sc_bwd)

        fwd_final = lax.fori_loop(0, n_iters, body, x, unroll=True)
        out_ref[...] = fwd_final.astype(out_ref.dtype)   # single store, after the loop

    return kernel


def icnn_couple_forward(fwd_packed, bwd_packed, stepsize, x, grad_fun=None):
    """fwd = x; fx = fwd_icnn(x); for i: fwd = bwd_icnn(fx - ss[i]*grad_fun(fwd)).

    Entire loop is ONE pallas_call with no grid: the iteration is an unrolled in-kernel
    fori_loop, stepsize sits in SMEM, both ICNNs' weights (stacked fwd/bwd pairs ->
    7 VMEM refs) are DMA'd once and stay resident for all iterations.
    `grad_fun` must be a jnp-traceable callable (it is inlined into the kernel).
    """
    if grad_fun is None:
        raise RuntimeError("Gradient function not provided")
    B, D = x.shape
    L, H = fwd_packed["num_layers"], fwd_packed["hidden"]
    n_iters = int(stepsize.shape[0])
    stacked = {k: jnp.stack([fwd_packed[k], bwd_packed[k]]) for k in _WEIGHT_KEYS}
    kern = make_couple_kernel(L, H, fwd_packed["strong_convexity"],
                              bwd_packed["strong_convexity"], grad_fun, n_iters)
    weight_spec = pl.BlockSpec(memory_space=pltpu.MemorySpace.VMEM)
    return pl.pallas_call(
        kern,
        out_shape=jax.ShapeDtypeStruct((B, D), jnp.float32),
        in_specs=[pl.BlockSpec(memory_space=pltpu.MemorySpace.SMEM),   # stepsize
                  pl.BlockSpec(memory_space=pltpu.MemorySpace.VMEM)]   # x
                 + [weight_spec] * len(_WEIGHT_KEYS),
        out_specs=pl.BlockSpec(memory_space=pltpu.MemorySpace.VMEM),
    )(stepsize, x, *(stacked[k] for k in _WEIGHT_KEYS))


# --------------------------- parameter construction -------------------------- #
def init_icnn_params(key, in_dim, hidden, num_layers, strong_convexity):
    """Synthetic raw weights with ICNN shapes (only the entries scalar() actually uses;
    the extra wx_*[L] / wz[L-1] layers in the PyTorch __init__ are dead weights)."""
    ks = jax.random.split(key, 7)
    aq = 0.1 * jax.random.normal(ks[0], (num_layers, hidden, in_dim), jnp.float32)
    bl = 0.1 * jax.random.normal(ks[1], (num_layers, hidden, in_dim), jnp.float32)
    bb = 0.1 * jax.random.normal(ks[2], (num_layers, 1, hidden), jnp.float32)
    # wz positive, as after ICNN.initialize_weights(mean=-4, std=0.1).exp_()
    wz = jnp.exp(-4.0 + 0.1 * jax.random.normal(ks[3], (num_layers - 1, hidden, hidden),
                                                jnp.float32))
    aq_last = 0.1 * jax.random.normal(ks[4], (1, in_dim), jnp.float32)
    bl_last = 0.1 * jax.random.normal(ks[5], (1, in_dim), jnp.float32)
    wz_last = jnp.exp(-4.0 + 0.1 * jax.random.normal(ks[6], (1, hidden), jnp.float32))
    return dict(num_layers=num_layers, hidden=hidden, in_dim=in_dim,
                strong_convexity=strong_convexity,
                aq=aq, bl=bl, bb=bb, wz=wz,
                aq_last=aq_last, bl_last=bl_last, wz_last=wz_last)


def pack_icnn_params(raw):
    """Pre-transpose / pre-stack weights into the kernel-ready, lane-dense layout."""
    L, H, D = raw["num_layers"], raw["hidden"], raw["in_dim"]
    assert L >= 2
    quad_T = jnp.transpose(raw["aq"], (2, 0, 1)).reshape(D, L * H)   # cols l = wx_quad[l].T
    lin_T = jnp.transpose(raw["bl"], (2, 0, 1)).reshape(D, L * H)    # cols l = wx_lin[l].T
    w_fproj = jnp.concatenate([quad_T, lin_T], axis=1)               # (D, 2*L*H)
    w_bproj = w_fproj.T                                              # (2*L*H, D)
    b_lin = raw["bb"].reshape(1, L * H)
    wz_f = jnp.transpose(raw["wz"], (0, 2, 1))                       # wz[l].T
    wz_b = raw["wz"]                                                 # wz[l]
    x_last = jnp.concatenate([raw["aq_last"], raw["bl_last"]], axis=0)  # (2, D)
    # NOTE: cast w_fproj / w_bproj / wz_* to bf16 here (keep f32 accumulation) only once
    # B/H reach MXU-sized tiles; at the current tiny shapes f32 keeps autodiff tolerance.
    return dict(num_layers=L, hidden=H, in_dim=D,
                strong_convexity=raw["strong_convexity"],
                w_fproj=w_fproj, w_bproj=w_bproj, b_lin=b_lin,
                wz_f=wz_f, wz_b=wz_b, x_last=x_last, wz_last=raw["wz_last"])


# ------------------------- pure-JAX reference (autodiff) --------------------- #
def _icnn_scalar_ref(raw, x):
    L = raw["num_layers"]
    z = None
    for l in range(L):
        p = (x @ raw["aq"][l].T) ** 2 + x @ raw["bl"][l].T + raw["bb"][l]
        if l > 0:
            p = p + z @ raw["wz"][l - 1].T
        z = jnp.where(p > 0, p, NEG_SLOPE * p)
    return z @ raw["wz_last"].T + (x @ raw["aq_last"].T) ** 2 + x @ raw["bl_last"].T


def _icnn_forward_ref(raw, x):
    sc = raw["strong_convexity"]
    grad = jax.grad(lambda xx: jnp.sum(_icnn_scalar_ref(raw, xx)))(x)
    return (1.0 - sc) * grad + sc * x


# ---------------------------------- main ------------------------------------- #
if __name__ == "__main__":
    B, D, H, L = 8, 16, 32, 4          # batch, in_dim, hidden, num_layers  (L*H = 128 lanes)
    NUM_ITERS = 5
    SC = 0.5                            # strong_convexity

    key = jax.random.PRNGKey(0)
    kx, kf, kb = jax.random.split(key, 3)
    x = jax.random.normal(kx, (B, D), jnp.float32)

    fwd_raw = init_icnn_params(kf, D, H, L, SC)
    bwd_raw = init_icnn_params(kb, D, H, L, SC)
    fwd_packed = pack_icnn_params(fwd_raw)
    bwd_packed = pack_icnn_params(bwd_raw)
    stepsize = 0.01 * jnp.ones((NUM_ITERS,), jnp.float32)
    grad_fun = lambda v: 2.0 * v        # user-supplied gradient function, inlined in kernel

    # --- ICNN.forward (the spec module) via a single Pallas kernel ---
    y = jax.block_until_ready(icnn_apply(fwd_packed, x))
    y_ref = _icnn_forward_ref(fwd_raw, x)
    assert y.shape == (B, D)
    assert jnp.allclose(y, y_ref, atol=2e-3, rtol=2e-3), "ICNN.forward mismatch vs autodiff"

    # --- fused ICNNCouple-style loop: one kernel invocation for all iterations ---
    out = jax.block_until_ready(
        icnn_couple_forward(fwd_packed, bwd_packed, stepsize, x, grad_fun))
    fwd_ref = x
    fx_ref = _icnn_forward_ref(fwd_raw, x)
    for i in range(NUM_ITERS):
        fwd_ref = _icnn_forward_ref(bwd_raw, fx_ref - stepsize[i] * grad_fun(fwd_ref))
    assert out.shape == (B, D)
    assert jnp.allclose(out, fwd_ref, atol=2e-3, rtol=2e-3), "couple loop mismatch vs autodiff"

    print("KERNEL_OK")
</pallas_src>

<mosaic_0001>
module attributes {stable_mosaic.version = 11 : i64} {
  func.func @kernel(%arg0: i32, %arg1: memref<8x16xf32, #tpu.memory_space<vmem>>, %arg2: memref<16x256xf32, #tpu.memory_space<vmem>>, %arg3: memref<256x16xf32, #tpu.memory_space<vmem>>, %arg4: memref<1x128xf32, #tpu.memory_space<vmem>>, %arg5: memref<3x32x32xf32, #tpu.memory_space<vmem>>, %arg6: memref<3x32x32xf32, #tpu.memory_space<vmem>>, %arg7: memref<2x16xf32, #tpu.memory_space<vmem>>, %arg8: memref<1x32xf32, #tpu.memory_space<vmem>>, %arg9: memref<8x16xf32, #tpu.memory_space<vmem>>) attributes {dimension_semantics = [#tpu.dimension_semantics<parallel>], iteration_bounds = array<i64: 1>, scalar_prefetch = 0 : i64, scratch_operands = 0 : i64, tpu.core_type = #tpu.core_type<tc>, window_params = [{transform_indices = @transform_0, window_bounds = array<i64: 8, 16>}, {pipeline_mode = #tpu.pipeline_mode<synchronous>, transform_indices = @transform_1, window_bounds = array<i64: 16, 256>}, {pipeline_mode = #tpu.pipeline_mode<synchronous>, transform_indices = @transform_2, window_bounds = array<i64: 256, 16>}, {pipeline_mode = #tpu.pipeline_mode<synchronous>, transform_indices = @transform_3, window_bounds = array<i64: 1, 128>}, {pipeline_mode = #tpu.pipeline_mode<synchronous>, transform_indices = @transform_4, window_bounds = array<i64: 3, 32, 32>}, {pipeline_mode = #tpu.pipeline_mode<synchronous>, transform_indices = @transform_5, window_bounds = array<i64: 3, 32, 32>}, {pipeline_mode = #tpu.pipeline_mode<synchronous>, transform_indices = @transform_6, window_bounds = array<i64: 2, 16>}, {pipeline_mode = #tpu.pipeline_mode<synchronous>, transform_indices = @transform_7, window_bounds = array<i64: 1, 32>}, {transform_indices = @transform_8, window_bounds = array<i64: 8, 16>}]} {
    %c0 = arith.constant 0 : index
    %c0_0 = arith.constant 0 : index
    %0 = vector.load %arg1[%c0, %c0_0] : memref<8x16xf32, #tpu.memory_space<vmem>>, vector<8x16xf32>
    %c0_1 = arith.constant 0 : index
    %c0_2 = arith.constant 0 : index
    %1 = vector.load %arg2[%c0_1, %c0_2] : memref<16x256xf32, #tpu.memory_space<vmem>>, vector<16x256xf32>
    %c0_3 = arith.constant 0 : index
    %c0_4 = arith.constant 0 : index
    %2 = vector.load %arg3[%c0_3, %c0_4] : memref<256x16xf32, #tpu.memory_space<vmem>>, vector<256x16xf32>
    %c0_5 = arith.constant 0 : index
    %c0_6 = arith.constant 0 : index
    %3 = vector.load %arg4[%c0_5, %c0_6] : memref<1x128xf32, #tpu.memory_space<vmem>>, vector<1x128xf32>
    %c0_7 = arith.constant 0 : index
    %c0_8 = arith.constant 0 : index
    %c0_9 = arith.constant 0 : index
    %4 = vector.load %arg5[%c0_7, %c0_8, %c0_9] : memref<3x32x32xf32, #tpu.memory_space<vmem>>, vector<3x32x32xf32>
    %c0_10 = arith.constant 0 : index
    %c0_11 = arith.constant 0 : index
    %c0_12 = arith.constant 0 : index
    %5 = vector.load %arg6[%c0_10, %c0_11, %c0_12] : memref<3x32x32xf32, #tpu.memory_space<vmem>>, vector<3x32x32xf32>
    %c0_13 = arith.constant 0 : index
    %c0_14 = arith.constant 0 : index
    %6 = vector.load %arg7[%c0_13, %c0_14] : memref<2x16xf32, #tpu.memory_space<vmem>>, vector<2x16xf32>
    %c0_15 = arith.constant 0 : index
    %c0_16 = arith.constant 0 : index
    %7 = vector.load %arg8[%c0_15, %c0_16] : memref<1x32xf32, #tpu.memory_space<vmem>>, vector<1x32xf32>
    %cst = arith.constant dense<0.000000e+00> : vector<8x256xf32>
    %8 = tpu.matmul %0, %1, %cst {dimension_numbers = #tpu.dot_dimension_numbers<[1], [0], [0], [1], [0, 0, 1, 1], [], []>} : vector<8x16xf32>, vector<16x256xf32>, vector<8x256xf32> -> vector<8x256xf32>
    %9 = vector.extract_strided_slice %8 {offsets = [0, 0], sizes = [8, 128], strides = [1, 1]} : vector<8x256xf32> to vector<8x128xf32>
    %10 = arith.mulf %9, %9 : vector<8x128xf32>
    %11 = vector.extract_strided_slice %8 {offsets = [0, 128], sizes = [8, 128], strides = [1, 1]} : vector<8x256xf32> to vector<8x128xf32>
    %12 = arith.addf %10, %11 : vector<8x128xf32>
    %13 = vector.broadcast %3 : vector<1x128xf32> to vector<8x128xf32>
    %14 = arith.addf %12, %13 : vector<8x128xf32>
    %15 = vector.extract_strided_slice %14 {offsets = [0, 0], sizes = [8, 32], strides = [1, 1]} : vector<8x128xf32> to vector<8x32xf32>
    %cst_17 = arith.constant 0.000000e+00 : f32
    %16 = vector.broadcast %cst_17 : f32 to vector<8x32xf32>
    %17 = arith.cmpf ogt, %15, %16 : vector<8x32xf32>
    %cst_18 = arith.constant 1.000000e+00 : f32
    %cst_19 = arith.constant 2.000000e-01 : f32
    %18 = vector.broadcast %cst_18 : f32 to vector<8x32xf32>
    %19 = vector.broadcast %cst_19 : f32 to vector<8x32xf32>
    %20 = arith.select %17, %18, %19 : vector<8x32xi1>, vector<8x32xf32>
    %21 = arith.mulf %15, %20 : vector<8x32xf32>
    %22 = vector.extract_strided_slice %14 {offsets = [0, 32], sizes = [8, 32], strides = [1, 1]} : vector<8x128xf32> to vector<8x32xf32>
    %23 = vector.extract_strided_slice %4 {offsets = [0, 0, 0], sizes = [1, 32, 32], strides = [1, 1, 1]} : vector<3x32x32xf32> to vector<1x32x32xf32>
    %24 = vector.shape_cast %23 : vector<1x32x32xf32> to vector<32x32xf32>
    %cst_20 = arith.constant dense<0.000000e+00> : vector<8x32xf32>
    %25 = tpu.matmul %21, %24, %cst_20 {dimension_numbers = #tpu.dot_dimension_numbers<[1], [0], [0], [1], [0, 0, 1, 1], [], []>} : vector<8x32xf32>, vector<32x32xf32>, vector<8x32xf32> -> vector<8x32xf32>
    %26 = arith.addf %22, %25 : vector<8x32xf32>
    %cst_21 = arith.constant 0.000000e+00 : f32
    %27 = vector.broadcast %cst_21 : f32 to vector<8x32xf32>
    %28 = arith.cmpf ogt, %26, %27 : vector<8x32xf32>
    %cst_22 = arith.constant 1.000000e+00 : f32
    %cst_23 = arith.constant 2.000000e-01 : f32
    %29 = vector.broadcast %cst_22 : f32 to vector<8x32xf32>
    %30 = vector.broadcast %cst_23 : f32 to vector<8x32xf32>
    %31 = arith.select %28, %29, %30 : vector<8x32xi1>, vector<8x32xf32>
    %32 = arith.mulf %26, %31 : vector<8x32xf32>
    %33 = vector.extract_strided_slice %14 {offsets = [0, 64], sizes = [8, 32], strides = [1, 1]} : vector<8x128xf32> to vector<8x32xf32>
    %34 = vector.extract_strided_slice %4 {offsets = [1, 0, 0], sizes = [1, 32, 32], strides = [1, 1, 1]} : vector<3x32x32xf32> to vector<1x32x32xf32>
    %35 = vector.shape_cast %34 : vector<1x32x32xf32> to vector<32x32xf32>
    %cst_24 = arith.constant dense<0.000000e+00> : vector<8x32xf32>
    %36 = tpu.matmul %32, %35, %cst_24 {dimension_numbers = #tpu.dot_dimension_numbers<[1], [0], [0], [1], [0, 0, 1, 1], [], []>} : vector<8x32xf32>, vector<32x32xf32>, vector<8x32xf32> -> vector<8x32xf32>
    %37 = arith.addf %33, %36 : vector<8x32xf32>
    %cst_25 = arith.constant 0.000000e+00 : f32
    %38 = vector.broadcast %cst_25 : f32 to vector<8x32xf32>
    %39 = arith.cmpf ogt, %37, %38 : vector<8x32xf32>
    %cst_26 = arith.constant 1.000000e+00 : f32
    %cst_27 = arith.constant 2.000000e-01 : f32
    %40 = vector.broadcast %cst_26 : f32 to vector<8x32xf32>
    %41 = vector.broadcast %cst_27 : f32 to vector<8x32xf32>
    %42 = arith.select %39, %40, %41 : vector<8x32xi1>, vector<8x32xf32>
    %43 = arith.mulf %37, %42 : vector<8x32xf32>
    %44 = vector.extract_strided_slice %14 {offsets = [0, 96], sizes = [8, 32], strides = [1, 1]} : vector<8x128xf32> to vector<8x32xf32>
    %45 = vector.extract_strided_slice %4 {offsets = [2, 0, 0], sizes = [1, 32, 32], strides = [1, 1, 1]} : vector<3x32x32xf32> to vector<1x32x32xf32>
    %46 = vector.shape_cast %45 : vector<1x32x32xf32> to vector<32x32xf32>
    %cst_28 = arith.constant dense<0.000000e+00> : vector<8x32xf32>
    %47 = tpu.matmul %43, %46, %cst_28 {dimension_numbers = #tpu.dot_dimension_numbers<[1], [0], [0], [1], [0, 0, 1, 1], [], []>} : vector<8x32xf32>, vector<32x32xf32>, vector<8x32xf32> -> vector<8x32xf32>
    %48 = arith.addf %44, %47 : vector<8x32xf32>
    %cst_29 = arith.constant 0.000000e+00 : f32
    %49 = vector.broadcast %cst_29 : f32 to vector<8x32xf32>
    %50 = arith.cmpf ogt, %48, %49 : vector<8x32xf32>
    %cst_30 = arith.constant 1.000000e+00 : f32
    %cst_31 = arith.constant 2.000000e-01 : f32
    %51 = vector.broadcast %cst_30 : f32 to vector<8x32xf32>
    %52 = vector.broadcast %cst_31 : f32 to vector<8x32xf32>
    %53 = arith.select %50, %51, %52 : vector<8x32xi1>, vector<8x32xf32>
    %54 = vector.extract_strided_slice %6 {offsets = [0, 0], sizes = [1, 16], strides = [1, 1]} : vector<2x16xf32> to vector<1x16xf32>
    %55 = vector.extract_strided_slice %6 {offsets = [1, 0], sizes = [1, 16], strides = [1, 1]} : vector<2x16xf32> to vector<1x16xf32>
    %56 = vector.broadcast %54 : vector<1x16xf32> to vector<8x16xf32>
    %57 = arith.mulf %0, %56 : vector<8x16xf32>
    %cst_32 = arith.constant dense<0.000000e+00> : vector<8xf32>
    %58 = vector.multi_reduction <add>, %57, %cst_32 [1] : vector<8x16xf32> to vector<8xf32>
    %59 = vector.shape_cast %58 : vector<8xf32> to vector<8x1xf32>
    %cst_33 = arith.constant 2.000000e+00 : f32
    %60 = vector.broadcast %cst_33 : f32 to vector<8x1xf32>
    %61 = arith.mulf %60, %59 : vector<8x1xf32>
    %62 = vector.broadcast %61 : vector<8x1xf32> to vector<8x16xf32>
    %63 = vector.broadcast %54 : vector<1x16xf32> to vector<8x16xf32>
    %64 = arith.mulf %62, %63 : vector<8x16xf32>
    %65 = vector.broadcast %55 : vector<1x16xf32> to vector<8x16xf32>
    %66 = arith.addf %64, %65 : vector<8x16xf32>
    %67 = vector.shape_cast %7 : vector<1x32xf32> to vector<1x32xf32>
    %68 = vector.broadcast %67 : vector<1x32xf32> to vector<8x32xf32>
    %69 = arith.mulf %68, %53 : vector<8x32xf32>
    %70 = vector.extract_strided_slice %5 {offsets = [2, 0, 0], sizes = [1, 32, 32], strides = [1, 1, 1]} : vector<3x32x32xf32> to vector<1x32x32xf32>
    %71 = vector.shape_cast %70 : vector<1x32x32xf32> to vector<32x32xf32>
    %cst_34 = arith.constant dense<0.000000e+00> : vector<8x32xf32>
    %72 = tpu.matmul %69, %71, %cst_34 {dimension_numbers = #tpu.dot_dimension_numbers<[1], [0], [0], [1], [0, 0, 1, 1], [], []>} : vector<8x32xf32>, vector<32x32xf32>, vector<8x32xf32> -> vector<8x32xf32>
    %73 = arith.mulf %72, %42 : vector<8x32xf32>
    %74 = vector.extract_strided_slice %5 {offsets = [1, 0, 0], sizes = [1, 32, 32], strides = [1, 1, 1]} : vector<3x32x32xf32> to vector<1x32x32xf32>
    %75 = vector.shape_cast %74 : vector<1x32x32xf32> to vector<32x32xf32>
    %cst_35 = arith.constant dense<0.000000e+00> : vector<8x32xf32>
    %76 = tpu.matmul %73, %75, %cst_35 {dimension_numbers = #tpu.dot_dimension_numbers<[1], [0], [0], [1], [0, 0, 1, 1], [], []>} : vector<8x32xf32>, vector<32x32xf32>, vector<8x32xf32> -> vector<8x32xf32>
    %77 = arith.mulf %76, %31 : vector<8x32xf32>
    %78 = vector.extract_strided_slice %5 {offsets = [0, 0, 0], sizes = [1, 32, 32], strides = [1, 1, 1]} : vector<3x32x32xf32> to vector<1x32x32xf32>
    %79 = vector.shape_cast %78 : vector<1x32x32xf32> to vector<32x32xf32>
    %cst_36 = arith.constant dense<0.000000e+00> : vector<8x32xf32>
    %80 = tpu.matmul %77, %79, %cst_36 {dimension_numbers = #tpu.dot_dimension_numbers<[1], [0], [0], [1], [0, 0, 1, 1], [], []>} : vector<8x32xf32>, vector<32x32xf32>, vector<8x32xf32> -> vector<8x32xf32>
    %81 = arith.mulf %80, %20 : vector<8x32xf32>
    %82 = tpu.concatenate %81, %77, %73, %69 in 1 : vector<8x32xf32>, vector<8x32xf32>, vector<8x32xf32>, vector<8x32xf32> -> vector<8x128xf32>
    %cst_37 = arith.constant 2.000000e+00 : f32
    %83 = vector.broadcast %cst_37 : f32 to vector<8x128xf32>
    %84 = arith.mulf %83, %9 : vector<8x128xf32>
    %85 = arith.mulf %84, %82 : vector<8x128xf32>
    %86 = tpu.concatenate %85, %82 in 1 : vector<8x128xf32>, vector<8x128xf32> -> vector<8x256xf32>
    %cst_38 = arith.constant dense<0.000000e+00> : vector<8x16xf32>
    %87 = tpu.matmul %86, %2, %cst_38 {dimension_numbers = #tpu.dot_dimension_numbers<[1], [0], [0], [1], [0, 0, 1, 1], [], []>} : vector<8x256xf32>, vector<256x16xf32>, vector<8x16xf32> -> vector<8x16xf32>
    %88 = arith.addf %66, %87 : vector<8x16xf32>
    %cst_39 = arith.constant 5.000000e-01 : f32
    %89 = vector.broadcast %cst_39 : f32 to vector<8x16xf32>
    %90 = arith.mulf %89, %88 : vector<8x16xf32>
    %cst_40 = arith.constant 5.000000e-01 : f32
    %91 = vector.broadcast %cst_40 : f32 to vector<8x16xf32>
    %92 = arith.mulf %91, %0 : vector<8x16xf32>
    %93 = arith.addf %90, %92 : vector<8x16xf32>
    %c0_41 = arith.constant 0 : index
    %c0_42 = arith.constant 0 : index
    %94 = vector.load %arg9[%c0_41, %c0_42] : memref<8x16xf32, #tpu.memory_space<vmem>>, vector<8x16xf32>
    tpu.vector_store %arg9[%c0_41, %c0_42], %93 {strides = array<i32>} : memref<8x16xf32, #tpu.memory_space<vmem>>, vector<8x16xf32>,
    return
  }
  func.func @transform_0(%arg0: i32) -> (i32, i32) {
    %c0_i32 = arith.constant 0 : i32
    %c0_i32_0 = arith.constant 0 : i32
    return %arg0, %c0_i32 : i32, i32
  }
  func.func @transform_1(%arg0: i32) -> (i32, i32) {
    %c0_i32 = arith.constant 0 : i32
    %c0_i32_0 = arith.constant 0 : i32
    %c0_i32_1 = arith.constant 0 : i32
    return %c0_i32, %c0_i32_0 : i32, i32
  }
  func.func @transform_2(%arg0: i32) -> (i32, i32) {
    %c0_i32 = arith.constant 0 : i32
    %c0_i32_0 = arith.constant 0 : i32
    %c0_i32_1 = arith.constant 0 : i32
    return %c0_i32, %c0_i32_0 : i32, i32
  }
  func.func @transform_3(%arg0: i32) -> (i32, i32) {
    %c0_i32 = arith.constant 0 : i32
    %c0_i32_0 = arith.constant 0 : i32
    %c0_i32_1 = arith.constant 0 : i32
    return %c0_i32, %c0_i32_0 : i32, i32
  }
  func.func @transform_4(%arg0: i32) -> (i32, i32, i32) {
    %c0_i32 = arith.constant 0 : i32
    %c0_i32_0 = arith.constant 0 : i32
    %c0_i32_1 = arith.constant 0 : i32
    %c0_i32_2 = arith.constant 0 : i32
    return %c0_i32, %c0_i32_0, %c0_i32_1 : i32, i32, i32
  }
  func.func @transform_5(%arg0: i32) -> (i32, i32, i32) {
    %c0_i32 = arith.constant 0 : i32
    %c0_i32_0 = arith.constant 0 : i32
    %c0_i32_1 = arith.constant 0 : i32
    %c0_i32_2 = arith.constant 0 : i32
    return %c0_i32, %c0_i32_0, %c0_i32_1 : i32, i32, i32
  }
  func.func @transform_6(%arg0: i32) -> (i32, i32) {
    %c0_i32 = arith.constant 0 : i32
    %c0_i32_0 = arith.constant 0 : i32
    %c0_i32_1 = arith.constant 0 : i32
    return %c0_i32, %c0_i32_0 : i32, i32
  }
  func.func @transform_7(%arg0: i32) -> (i32, i32) {
    %c0_i32 = arith.constant 0 : i32
    %c0_i32_0 = arith.constant 0 : i32
    %c0_i32_1 = arith.constant 0 : i32
    return %c0_i32, %c0_i32_0 : i32, i32
  }
  func.func @transform_8(%arg0: i32) -> (i32, i32) {
    %c0_i32 = arith.constant 0 : i32
    %c0_i32_0 = arith.constant 0 : i32
    return %arg0, %c0_i32 : i32, i32
  }
}

</mosaic_0001>

<bundles_post_ra>
// kernel: tpu_custom_call.1
= control target key start
LH: loop header
LB: loop body
LE: loop exit
PB: predicated region body
PF: predicated region fallthrough
CT: control target
= control target key end

     0   :  { %v1033_v5 = vmov 0.0   ;;  %s1365_s0 = inlined_call_operand.vmem [shape: f32[8,16], index: 0, kind: input, shape index: {}]   ;;  %s1366_s1 = inlined_call_operand.vmem [shape: f32[16,256], index: 1, kind: input, shape index: {}]   ;;  %s1367_s2 = inlined_call_operand.vmem [shape: f32[256,16], index: 2, kind: input, shape index: {}]   ;;  %s1368_s3 = inlined_call_operand.vmem [shape: f32[1,128], index: 3, kind: input, shape index: {}]   ;;  %s1369_s4 = inlined_call_operand.vmem [shape: f32[3,32,32], index: 4, kind: input, shape index: {}]   ;;  %s1370_s5 = inlined_call_operand.vmem [shape: f32[3,32,32], index: 5, kind: input, shape index: {}]   ;;  %s1371_s6 = inlined_call_operand.vmem [shape: f32[2,16], index: 6, kind: input, shape index: {}]   ;;  %s1372_s7 = inlined_call_operand.vmem [shape: f32[1,32], index: 7, kind: input, shape index: {}]   ;;  %s1373_s8 = inlined_call_operand.hbm [shape: f32[8,16], index: 8, kind: output, shape index: {}]  }
   0x1   :  { %v32_v0 = vld [vmem:[%s1366_s1 + $0x8] sm:$0xff]  ;;  %v34_v1 = vld [vmem:[%s1366_s1 + $0x18] sm:$0xff]  ;;  %v31_v2 = vld [vmem:[%s1366_s1] sm:$0xff]  ;;  %162 = vmatprep.mubr.f32.mxu0 %v1033_v5 }
   0x2   :  { %v929_v3 = vpack.c.bf16 %v34_v1, %v32_v0  ;;  %v33_v4 = vld [vmem:[%s1366_s1 + $0x10] sm:$0xff] }
   0x3   :  { %13 = vsyncpa [#allocation3], 0  ;;  %v931_v6 = vpack.c.bf16 %v33_v4, %v31_v2  ;;  %v1102_v7 = vld [vmem:[%s1365_s0] sm:$0xff]  ;;  %vm94_vm0 = vcmask 130048   ;;  %v69_v9 = vld [vmem:[%s1369_s4 + $0x8] sm:$0xff]  ;;  %v1034_v11 = vmov 0.0|0.0  }
   0x4   :  { %930 = vmatprep.subr.bf16.mxu0 %v929_v3  ;;  %v68_v8 = vld [vmem:[%s1369_s4] sm:$0xff]  ;;  %957 = vmatprep.subr.bf16.mxu1 %v1034_v11  ;;  %v70_v12 = vld [vmem:[%s1369_s4 + $0x10] sm:$0xff]  ;;  %v71_v13 = vld [vmem:[%s1369_s4 + $0x18] sm:$0xff]  ;;  %vm1035_vm1 = vmmov 0   ;;  %v1036_v21 = vmov 0.2  }
   0x5   :  { %932 = vmatpush1.bf16.msra.mxu0 %v931_v6  ;;  %v934_v10 = vpack.c.bf16 %v69_v9, %v68_v8  ;;  %v937_v14 = vpack.c.bf16 %v71_v13, %v70_v12  ;;  %915 = vmatprep.mubr.msk.f32.mxu1 %vm1035_vm1, %v1033_v5  ;;  %v790_v18 = vld [vmem:[%s1368_s3] ss:$0 sm:$0xff]  ;;  %vm181_vm3 = vcmask 261120   ;;  %v73_v25 = vld [vmem:[%s1369_s4 + $0x28] sm:$0xff]  ;;  %v74_v26 = vld [vmem:[%s1369_s4 + $0x30] sm:$0xff]  ;;  %s1037_s30 = smov 32  }
   0x6   :  { %933 = vmatprep.subr.bf16.mxu0 %v1034_v11  ;;  %v72_v24 = vld [vmem:[%s1369_s4 + $0x20] sm:$0xff]  ;;  %v75_v28 = vld [vmem:[%s1369_s4 + $0x38] sm:$0xff]  ;;  %s1038_s9 = smov 96   ;;  %v77_v38 = vld [vmem:[%s1369_s4 + $0x48] sm:$0xff]  ;;  %s1039_s17 = smov 64   ;;  %vm694_vm7 = vcmask 523264  }
   0x7   :  { %v940_v27 = vpack.c.bf16 %v73_v25, %v72_v24  ;;  %v943_v29 = vpack.c.bf16 %v75_v28, %v74_v26  ;;  %v76_v37 = vld [vmem:[%s1369_s4 + $0x40] sm:$0xff]  ;;  %v78_v39 = vld [vmem:[%s1369_s4 + $0x50] sm:$0xff]  ;;  %v79_v41 = vld [vmem:[%s1369_s4 + $0x58] sm:$0xff]  ;;  %vm696_vm8 = vcmask 785408  }
   0x8   :  { %789 = vmatmul.mubr.msk.f32.vlgmr.msra.gmra.mrb[0].mxu0 %vm94_vm0, %v1102_v7  ;;  %v946_v40 = vpack.c.bf16 %v77_v38, %v76_v37  ;;  %v949_v42 = vpack.c.bf16 %v79_v41, %v78_v39  ;;  %v88_v50 = vld [vmem:[%s1370_s5 + $0x40] sm:$0xff]  ;;  %v89_v51 = vld [vmem:[%s1370_s5 + $0x48] sm:$0xff]  ;;  %v90_v52 = vld [vmem:[%s1370_s5 + $0x50] sm:$0xff] }
   0x9   :  { %935 = vmatpush3.bf16.msra.mxu0 %v934_v10  ;;  %871 = vmatprep.mubr.msk.f32.mxu0 %vm1035_vm1, %v1033_v5  ;;  %v952_v53 = vpack.c.bf16 %v89_v51, %v88_v50  ;;  %v91_v54 = vld [vmem:[%s1370_s5 + $0x58] sm:$0xff]  ;;  %v84_v58 = vld [vmem:[%s1370_s5 + $0x20] sm:$0xff]  ;;  %v85_v59 = vld [vmem:[%s1370_s5 + $0x28] sm:$0xff] }
   0xa   :  { %936 = vmatprep.subr.bf16.mxu0 %v1034_v11  ;;  %v955_v55 = vpack.c.bf16 %v91_v54, %v90_v52  ;;  %v958_v60 = vpack.c.bf16 %v85_v59, %v84_v58  ;;  %v794_v0 = vld [vmem:[%s1372_s7] ss:$0 sm:$0xff]  ;;  %v86_v3 = vld [vmem:[%s1370_s5 + $0x30] sm:$0xff]  ;;  %v87_v4 = vld [vmem:[%s1370_s5 + $0x38] sm:$0xff] }
   0xb   :  { %v961_v6 = vpack.c.bf16 %v87_v4, %v86_v3  ;;  %v80_v8 = vld [vmem:[%s1370_s5] sm:$0xff]  ;;  %v81_v9 = vld [vmem:[%s1370_s5 + $0x8] sm:$0xff]  ;;  %v53_v24 = vld [vmem:[%s1367_s2 + $0x90] sm:$0xff] }
   0xc   :  { %959 = vmatpush3.bf16.msra.mxu1 %v958_v60  ;;  %v964_v10 = vpack.c.bf16 %v81_v9, %v80_v8  ;;  %v54_v25 = vld [vmem:[%s1367_s2 + $0x98] sm:$0xff]  ;;  %v37_v28 = vld [vmem:[%s1367_s2 + $0x10] sm:$0xff]  ;;  %v43_v50 = vld [vmem:[%s1367_s2 + $0x40] sm:$0xff]  ;;  %v428_v9 = vlaneseq }
   0xd   :  { %938 = vmatpush3.bf16.msra.mxu0 %v937_v14  ;;  %960 = vmatprep.subr.bf16.mxu1 %v1034_v11  ;;  %v58_v37 = vld [vmem:[%s1367_s2 + $0xb8] sm:$0xff]  ;;  %v44_v51 = vld [vmem:[%s1367_s2 + $0x48] sm:$0xff]  ;;  %v61_v52 = vld [vmem:[%s1367_s2 + $0xd0] sm:$0xff] }
   0xe   :  { %939 = vmatprep.subr.bf16.mxu0 %v1034_v11  ;;  %v987_v54 = vpack.c.bf16 %v44_v51, %v43_v50  ;;  %v63_v59 = vld [vmem:[%s1367_s2 + $0xe0] sm:$0xff]  ;;  %v64_v60 = vld [vmem:[%s1367_s2 + $0xe8] sm:$0xff]  ;;  %v49_v4 = vld [vmem:[%s1367_s2 + $0x70] sm:$0xff] }
  0x10   :  { %962 = vmatpush3.bf16.msra.mxu1 %v961_v6  ;;  %v50_v6 = vld [vmem:[%s1367_s2 + $0x78] sm:$0xff] }
  0x11   :  { %v999_v8 = vpack.c.bf16 %v50_v6, %v49_v4 }
  0xdb   :  { %v1126_v15 = vpop.f32.mrb[0].mxu0 }
  0xdc   :  { %v169_v16 = vmul.f32 %v1126_v15, %v1126_v15  ;;  %v166_v17 = vpop.f32.mrb[1].mxu0 }
  0xde   :  { %v170_v19 = vadd.f32 %v169_v16, %v166_v17  ;;  %v82_v16 = vld [vmem:[%s1370_s5 + $0x10] sm:$0xff]  ;;  %v83_v17 = vld [vmem:[%s1370_s5 + $0x18] sm:$0xff] }
  0xe0   :  { %v1133_v20 = vadd.f32 %v790_v18, %v170_v19  ;;  %v967_v18 = vpack.c.bf16 %v83_v17, %v82_v16  ;;  %v52_v19 = vld [vmem:[%s1367_s2 + $0x88] sm:$0xff] }
  0xe2   :  { %vm178_vm2 = vcmp.gt.f32.partialorder %v1133_v20, 0.0 }
  0xe3   :  { %v1137_v22 = vsel %vm178_vm2, 1.0, %v1036_v21 }
  0xe4   :  { %v180_v23 = vmul.f32 %v1137_v22, %v1133_v20 }
  0xe6   :  { %872 = vmatmul.mubr.msk.f32.vlgmr.msra.gmra.mrb[2].mxu0 %vm181_vm3, %v180_v23  ;;  %v36_v23 = vld [vmem:[%s1367_s2 + $0x8] sm:$0xff] }
  0xe7   :  { %882 = vmatprep.mubr.msk.f32.mxu0 %vm1035_vm1, %v1033_v5  ;;  %941 = vmatpush3.bf16.msra.mxu0 %v940_v27  ;;  %v973_v27 = vpack.c.bf16 %v54_v25, %v53_v24  ;;  %v698_v25 = vmul.f32 2.0, %v1126_v15 }
  0xe8   :  { %942 = vmatprep.subr.bf16.mxu0 %v1034_v11 }
  0xeb   :  { %944 = vmatpush3.bf16.msra.mxu0 %v943_v29  ;;  %v38_v29 = vld [vmem:[%s1367_s2 + $0x18] sm:$0xff] }
  0xec   :  { %945 = vmatprep.subr.bf16.mxu0 %v1034_v11 }
 0x1b9   :  { %v251_v30 = vpop.f32.mrb[2].mxu0 }
 0x1ba   :  { %256 = vrot.lane.b32.xlu0 %v251_v30, %s1037_s30  ;;  %v873_v31 = vpop.f32.mrb[3].mxu0  ;;  %v55_v30 = vld [vmem:[%s1367_s2 + $0xa0] sm:$0xff] }
 0x1bb   :  { %v56_v31 = vld [vmem:[%s1367_s2 + $0xa8] sm:$0xff] }
 0x22c   :  { %v257_v32 = vpop.permute.xlu0 %256 }
 0x22d   :  { %v259_v33 = vadd.f32 %v257_v32, %v1133_v20  ;;  %v975_v32 = vpack.c.bf16 %v38_v29, %v37_v28 }
 0x22f   :  { %vm260_vm4 = vcmp.gt.f32.partialorder %v259_v33, 0.0 }
 0x230   :  { %v261_v34 = vsel %vm260_vm4, 1.0, %v1036_v21 }
 0x231   :  { %v262_v35 = vmul.f32 %v261_v34, %v259_v33  ;;  %v977_v33 = vpack.c.bf16 %v56_v31, %v55_v30 }
 0x233   :  { %264 = vrot.lane.b32.xlu0 %v262_v35, %s1038_s9  ;;  %v40_v35 = vld [vmem:[%s1367_s2 + $0x28] sm:$0xff] }
 0x2a5   :  { %v265_v36 = vpop.permute.xlu0 %264 }
 0x2a6   :  { %883 = vmatmul.mubr.msk.f32.vlgmr.msra.gmra.mrb[4].mxu0 %vm181_vm3, %v265_v36  ;;  %v57_v36 = vld [vmem:[%s1367_s2 + $0xb0] sm:$0xff] }
 0x2a7   :  { %893 = vmatprep.mubr.msk.f32.mxu0 %vm1035_vm1, %v1033_v5  ;;  %947 = vmatpush3.bf16.msra.mxu0 %v946_v40 }
 0x2a8   :  { %948 = vmatprep.subr.bf16.mxu0 %v1034_v11 }
 0x2ab   :  { %950 = vmatpush3.bf16.msra.mxu0 %v949_v42 }
 0x2ac   :  { %951 = vmatprep.subr.bf16.mxu0 %v1034_v11 }
 0x379   :  { %v334_v43 = vpop.f32.mrb[4].mxu0 }
 0x37a   :  { %339 = vrot.lane.b32.xlu1 %v334_v43, %s1039_s17  ;;  %v884_v44 = vpop.f32.mrb[5].mxu0  ;;  %v981_v43 = vpack.c.bf16 %v58_v37, %v57_v36  ;;  %v772_v37 = vmul.f32 0.5, %v1102_v7 }
 0x37b   :  { %v41_v44 = vld [vmem:[%s1367_s2 + $0x30] sm:$0xff] }
 0x3ec   :  { %v340_v45 = vpop.permute.xlu1 %339 }
 0x3ed   :  { %v342_v46 = vadd.f32 %v340_v45, %v1133_v20  ;;  %v42_v45 = vld [vmem:[%s1367_s2 + $0x38] sm:$0xff] }
 0x3ef   :  { %vm343_vm5 = vcmp.gt.f32.partialorder %v342_v46, 0.0 }
 0x3f0   :  { %v344_v47 = vsel %vm343_vm5, 1.0, %v1036_v21 }
 0x3f1   :  { %v345_v48 = vmul.f32 %v344_v47, %v342_v46  ;;  %v59_v46 = vld [vmem:[%s1367_s2 + $0xc0] sm:$0xff] }
 0x3f3   :  { %347 = vrot.lane.b32.xlu1 %v345_v48, %s1039_s17  ;;  %v983_v48 = vpack.c.bf16 %v42_v45, %v41_v44 }
 0x465   :  { %v348_v49 = vpop.permute.xlu1 %347 }
 0x466   :  { %894 = vmatmul.mubr.msk.f32.vlgmr.msra.gmra.mrb[6].mxu0 %vm181_vm3, %v348_v49 }
 0x467   :  { %904 = vmatprep.mubr.msk.f32.mxu0 %vm1035_vm1, %v1033_v5  ;;  %953 = vmatpush3.bf16.msra.mxu0 %v952_v53  ;;  %v62_v53 = vld [vmem:[%s1367_s2 + $0xd8] sm:$0xff] }
 0x468   :  { %954 = vmatprep.subr.bf16.mxu0 %v1034_v11 }
 0x46b   :  { %956 = vmatpush3.bf16.msra.mxu0 %v955_v55  ;;  %v989_v55 = vpack.c.bf16 %v62_v53, %v61_v52 }
 0x46c   :  { %963 = vmatprep.subr.bf16.mxu0 %v1034_v11 }
 0x539   :  { %v417_v56 = vpop.f32.mrb[6].mxu0 }
 0x53a   :  { %422 = vrot.lane.b32.xlu0 %v417_v56, %s1038_s9  ;;  %v895_v57 = vpop.f32.mrb[7].mxu0  ;;  %v45_v56 = vld [vmem:[%s1367_s2 + $0x50] sm:$0xff] }
 0x53b   :  { %v46_v57 = vld [vmem:[%s1367_s2 + $0x58] sm:$0xff] }
 0x53c   :  { %v991_v58 = vpack.c.bf16 %v46_v57, %v45_v56 }
 0x53e   :  { %528 = vrot.lane.b32.xlu0 %v344_v47, %s1039_s17  ;;  %v60_v47 = vld [vmem:[%s1367_s2 + $0xc8] sm:$0xff] }
 0x53f   :  { %v985_v49 = vpack.c.bf16 %v60_v47, %v59_v46 }
 0x5ac   :  { %v423_v61 = vpop.permute.xlu0 %422 }
 0x5ad   :  { %v425_v62 = vadd.f32 %v423_v61, %v1133_v20  ;;  %v35_v20 = vld [vmem:[%s1367_s2] sm:$0xff]  ;;  %v993_v61 = vpack.c.bf16 %v64_v60, %v63_v59 }
 0x5ae   :  { %v971_v26 = vpack.c.bf16 %v36_v23, %v35_v20 }
 0x5af   :  { %vm426_vm6 = vcmp.gt.f32.partialorder %v425_v62, 0.0  ;;  %v47_v62 = vld [vmem:[%s1367_s2 + $0x60] sm:$0xff] }
 0x5b0   :  { %v427_v63 = vsel %vm426_vm6, 1.0, %v1036_v21 }
 0x5b1   :  { %450 = vrot.lane.b32.xlu1 %v427_v63, %s1037_s30  ;;  %v48_v63 = vld [vmem:[%s1367_s2 + $0x68] sm:$0xff] }
 0x5b5   :  { %606 = vrot.lane.b32.xlu1 %v261_v34, %s1038_s9  ;;  %v39_v34 = vld [vmem:[%s1367_s2 + $0x20] sm:$0xff] }
 0x5b6   :  { %v979_v42 = vpack.c.bf16 %v40_v35, %v39_v34 }
 0x623   :  { %v451_v1 = vpop.permute.xlu1 %450 }
 0x624   :  { %v1216_v2 = vmul.f32 %v794_v0, %v451_v1  ;;  %v995_v0 = vpack.c.bf16 %v48_v63, %v47_v62  ;;  %v65_v1 = vld [vmem:[%s1367_s2 + $0xf0] sm:$0xff] }
 0x626   :  { %905 = vmatmul.mubr.msk.f32.vlgmr.msra.gmra.mrb[8].mxu0 %vm181_vm3, %v1216_v2 }
 0x627   :  { %926 = vmatprep.mubr.msk.f32.mxu0 %vm1035_vm1, %v1033_v5  ;;  %965 = vmatpush3.bf16.msra.mxu0 %v964_v10  ;;  %v529_v5 = vpop.permute.xlu0 %528  ;;  %v607_v38 = vpop.permute.xlu1 %606  ;;  %v429_v10 = vshrl.u32 %v428_v9, 7 }
 0x628   :  { %966 = vmatprep.subr.bf16.mxu0 %v1034_v11  ;;  %v51_v11 = vld [vmem:[%s1367_s2 + $0x80] sm:$0xff] }
 0x629   :  { %v969_v21 = vpack.c.bf16 %v52_v19, %v51_v11 }
 0x62b   :  { %968 = vmatpush3.bf16.msra.mxu0 %v967_v18  ;;  %970 = vmatprep.subr.bf16.mxu1 %v969_v21 }
 0x6f9   :  { %v523_v12 = vpop.f32.mrb[8].mxu0 }
 0x6fa   :  { %v531_v13 = vmul.f32 %v529_v5, %v523_v12  ;;  %v906_v14 = vpop.f32.mrb[9].mxu0  ;;  %v92_v5 = vld [vmem:[%s1371_s6] sm:$0x3]  ;;  %v430_v12 = vsub.s32 0, %v429_v10 }
 0x6fc   :  { %687 = vrot.lane.b32.xlu1 %v531_v13, %s1039_s17  ;;  %916 = vmatmul.mubr.msk.f32.vlgmr.msra.gmra.mrb[0].mxu1 %vm181_vm3, %v531_v13  ;;  %v440_v13 = vsub.s32 1, %v429_v10  ;;  %v431_v14 = vrot.slane %v92_v5, %v430_v12 }
 0x6fd   :  { %972 = vmatpush3.bf16.msra.mxu1 %v971_v26 }
 0x6fe   :  { %974 = vmatprep.subr.bf16.mxu1 %v973_v27  ;;  %v441_v16 = vrot.slane %v92_v5, %v440_v13  ;;  %v432_v17 = vmul.f32 %v431_v14, %v1102_v7 }
 0x700   :  { %v433_v18 = vsel %vm94_vm0, %v432_v17, 0.0 }
 0x701   :  { %976 = vmatpush3.bf16.msra.mxu1 %v975_v32 }
 0x702   :  { %978 = vmatprep.subr.bf16.mxu1 %v977_v33 }
 0x705   :  { %980 = vmatpush3.bf16.msra.mxu1 %v979_v42 }
 0x706   :  { %982 = vmatprep.subr.bf16.mxu1 %v981_v43 }
 0x709   :  { %984 = vmatpush3.bf16.msra.mxu1 %v983_v48 }
 0x70a   :  { %986 = vmatprep.subr.bf16.mxu1 %v985_v49 }
 0x70d   :  { %988 = vmatpush3.bf16.msra.mxu1 %v987_v54 }
 0x70e   :  { %990 = vmatprep.subr.bf16.mxu1 %v989_v55 }
 0x711   :  { %992 = vmatpush3.bf16.msra.mxu1 %v991_v58 }
 0x712   :  { %994 = vmatprep.subr.bf16.mxu1 %v993_v61 }
 0x715   :  { %996 = vmatpush3.bf16.msra.mxu1 %v995_v0 }
 0x720   :  { %434 = vadd.xlane.f32.xlu1 %v433_v18 }
 0x76e   :  { %v688_v23 = vpop.permute.xlu1 %687 }
 0x7ad   :  { %v435_v30 = vpop.xlane.xlu1 %434 }
 0x7ae   :  { %v436_v31 = vmul.f32 2.0, %v435_v30 }
 0x7b0   :  { %v437_v32 = vmul.f32 %v436_v31, %v431_v14 }
 0x7b2   :  { %v442_v33 = vadd.f32 %v441_v16, %v437_v32 }
 0x7cf   :  { %v601_v39 = vpop.f32.mrb[0].mxu1 }
 0x7d0   :  { %v609_v40 = vmul.f32 %v607_v38, %v601_v39  ;;  %v917_v41 = vpop.f32.mrb[1].mxu1 }
 0x7d2   :  { %684 = vrot.lane.b32.xlu0 %v609_v40, %s1037_s30  ;;  %927 = vmatmul.mubr.msk.f32.vlgmr.msra.gmra.mrb[10].mxu0 %vm181_vm3, %v609_v40 }
 0x7d6   :  { %690 = vrot.lane.b32.xlu0 %v1216_v2, %s1038_s9  ;;  %v66_v2 = vld [vmem:[%s1367_s2 + $0xf8] sm:$0xff]  ;;  %s1040_s2 = smov [#allocation2]  }
 0x7d7   :  { %v997_v3 = vpack.c.bf16 %v66_v2, %v65_v1  ;;  %s781_s6 = sshll.u32 %s1040_s2, 4  ;;  %s782_s6 = int_to_ptr.vmem [resolvable:$true] %s781_s6 }
 0x7d8   :  { %s1009_s27 = scalar_lea.vmem %s782_s6, 128  ;;  %p1014_p1 = scmp.lt.s32.totalorder %s782_s6, %s782_s6 }
 0x7d9   :  { %998 = vmatprep.subr.bf16.mxu1 %v997_v3  ;;  %p1010_p0 = scmp.ne.s32.totalorder %s782_s6, %s1009_s27  ;;  %p1015_p2 = scmp.lt.s32.totalorder %s1009_s27, %s1009_s27 }
 0x7da   :  { %1000 = vmatpush3.bf16.msra.mxu1 %v999_v8 }
 0x7db   :  { %p1016_p3 = por %p1015_p2, %p1014_p1 }
 0x7dd   :  { %p1017_p4 = pnand %p1016_p3, %p1010_p0 }
 0x844   :  { %v685_v11 = vpop.permute.xlu0 %684 }
 0x848   :  { %v691_v26 = vpop.permute.xlu0 %690 }
 0x8a5   :  { %v679_v19 = vpop.f32.mrb[10].mxu0 }
 0x8a6   :  { %v683_v20 = vmul.f32 %v679_v19, %v1137_v22  ;;  %v928_v21 = vpop.f32.mrb[11].mxu0 }
 0x8a8   :  { %v693_v24 = vsel %vm181_vm3, %v683_v20, %v685_v11 }
 0x8a9   :  { %v695_v27 = vsel %vm694_vm7, %v693_v24, %v688_v23 }
 0x8aa   :  { %v697_v28 = vsel %vm696_vm8, %v695_v27, %v691_v26 }
 0x8ab   :  { %v699_v29 = vmul.f32 %v698_v25, %v697_v28  ;;  %764 = vmatprep.mubr.f32.mxu1 %v697_v28 }
 0x8ad   :  { %765 = vmatmul.mubr.f32.vlgmr.msra.gmra.mrb[2].mxu1 %v699_v29 }
 0x980   :  { %v860_v34 = vpop.f32.mrb[2].mxu1 }
 0x981   :  { %v861_v22 = vpop.f32.mrb[3].mxu1 }
 0x982   :  { %v862_v35 = vadd.f32 %v861_v22, %v860_v34 }
 0x984   :  { %v770_v36 = vadd.f32 %v862_v35, %v442_v33 }
 0x986   :  { %v771_v38 = vmul.f32 0.5, %v770_v36 }
 0x988   :  { %v773_v15 = vadd.f32 %v772_v37, %v771_v38 }
 0x98a   :  { %774 = vst.msk [vmem:[#allocation2] sm:$0xff] %vm94_vm0, %v773_v15 }
 0x98b   :  { %1020 = shalt.err (!%p1017_p4)
}
 0x98c   :  { %s1021_s29 = scalar_lea.hbm %s1373_s8, 128 }
 0x98d   :  { %p1022_p5 = scmp.ne.s32.totalorder %s1373_s8, %s1021_s29  ;;  %p1025_p6 = scmp.lt.u32.totalorder %s1021_s29, %s1373_s8 }
 0x98f   :  { %p1027_p7 = pnand %p1025_p6, %p1022_p5 }
 0x991   :  { %1030 = shalt.err (!%p1027_p7)
}
 0x992   :  { %784 = dma.vmem_to_hbm [thread:$0]  %s782_s6, 128, %s1373_s8, [#allocation3]  }
 0x993   :  { %1031 = dma.done.wait [#allocation3], 128  }
 0x994   :  { %1032 = vsyncadd [#allocation3], 4294967168 }
 0x995   :  { %788 = vsyncpa [#allocation3], 1 }

</bundles_post_ra>
